<compile_context>
chip_gen: v7x
topology: tpu7x:2x2x1
jax: 0.10.0
libtpu: 0.0.40
codegen_flags: <defaults>
</compile_context>

<pallas_src>
from functools import partial

import numpy as np
import jax
import jax.numpy as jnp
from jax.experimental import pallas as pl
from jax.experimental.pallas import tpu as pltpu


_LANE = 128
_MAX_ROW_TILE = 1024                 # v6e-friendly upper bound (budget-checked)
_VMEM_BUDGET = 12 * 1024 * 1024      # conservative: fits v5e/v6e/v7x scoped VMEM
_SMALL_R = 256                       # below this: one exact full-array block


def _round_up(x, m):
    return ((x + m - 1) // m) * m


def _col_to_lane_row(col_f32, row_ref):
    """Relayout a (tr, 1) f32 column of small non-negative ints into the
    lane-dense (1, tr) int32 `row_ref`, 128 lanes at a time.

    Uses a block-diagonal select + cross-sublane sum so the label output is a
    dense lane store instead of a (tr, 1) strided DMA."""
    tr = col_f32.shape[0]
    off = 0
    while off < tr:
        w = min(_LANE, tr - off)
        chunk = col_f32[off:off + w, :]                              # (w, 1)
        sub = jax.lax.broadcasted_iota(jnp.int32, (w, w), 0)
        lane = jax.lax.broadcasted_iota(jnp.int32, (w, w), 1)
        diag = jnp.where(sub == lane, chunk, 0.0)                    # (w, w)
        row = jnp.sum(diag, axis=0, keepdims=True)                   # (1, w)
        row_ref[:, off:off + w] = row.astype(jnp.int32)
        off += w


def _postprocess_kernel(with_boxes, *refs):
    if with_boxes:
        hoi_ref, obj_ref, slab_ref, hoi_s_ref, obj_s_ref, lbl_ref, box_ref = refs
    else:
        hoi_ref, obj_ref, hoi_s_ref, obj_s_ref, lbl_ref = refs

    # --- scores: sigmoid (logits arrive in native dtype, upcast in-register) --
    hoi_s_ref[...] = jax.nn.sigmoid(hoi_ref[...].astype(jnp.float32))
    ol = obj_ref[...].astype(jnp.float32)
    obj_s_ref[...] = jax.nn.sigmoid(ol)

    # --- obj labels: argmax over raw logits[..., :-1] -------------------------
    # (== argmax(softmax(x)[..., :-1]); first-index tie-break like torch .max)
    nc = ol.shape[-1]
    cls = jax.lax.broadcasted_iota(jnp.int32, ol.shape, 1)
    valid = cls < (nc - 1)
    masked = jnp.where(valid, ol, -jnp.inf)
    pmax = jnp.max(masked, axis=-1, keepdims=True)
    lbl_col = jnp.min(jnp.where((masked == pmax) & valid, cls, nc - 1),
                      axis=-1, keepdims=True).astype(jnp.float32)     # (tr, 1)
    _col_to_lane_row(lbl_col, lbl_ref)

    if not with_boxes:
        return

    # --- boxes: cxcywh -> xyxy * [img_w, img_h, img_w, img_h] ----------------
    # slab rows: 0-3 sub cxcywh | 4-7 obj cxcywh | 8,9 = img_w, img_h
    sc = slab_ref[8:10, :]                                            # (2, tr)
    for base in (0, 4):
        c = slab_ref[base:base + 2, :]                                # cx, cy
        half = 0.5 * slab_ref[base + 2:base + 4, :]                   # w/2, h/2
        box_ref[base:base + 2, :] = (c - half) * sc                   # x0, y0
        box_ref[base + 2:base + 4, :] = (c + half) * sc               # x1, y1


def _pick_row_tile(R, per_row_bytes):
    if R <= _SMALL_R:
        return R                                      # single exact block
    # at least 2 grid steps so both v7x TensorCores get work
    tr = min(_MAX_ROW_TILE, _round_up(-(-R // 2), _LANE))
    # keep the double-buffered working set within a conservative VMEM budget
    while tr > _LANE and 2 * tr * per_row_bytes > _VMEM_BUDGET:
        tr -= _LANE
    return tr


@partial(jax.jit, static_argnames=("with_boxes",))
def postprocess_core(pred_hoi_logits, pred_obj_logits, pred_sub_boxes,
                     pred_obj_boxes, target_sizes, with_boxes=True):
    B, Q, NH = pred_hoi_logits.shape
    NC = pred_obj_logits.shape[-1]
    R = B * Q

    hoi = pred_hoi_logits.reshape(R, NH)      # native dtype, no host cast
    obj = pred_obj_logits.reshape(R, NC)
    ib_h = jnp.dtype(hoi.dtype).itemsize
    ib_o = jnp.dtype(obj.dtype).itemsize

    per_row = NH * (ib_h + 4) + NC * (ib_o + 4) + (16 * 4 + 8 * 4 + 4)
    tr = _pick_row_tile(R, per_row)
    grid = -(-R // tr)                        # cdiv; partial last block is clipped

    inputs = [hoi, obj]
    in_specs = [
        pl.BlockSpec((tr, NH), lambda t: (t, 0)),
        pl.BlockSpec((tr, NC), lambda t: (t, 0)),
    ]
    out_shape = [
        jax.ShapeDtypeStruct((R, NH), jnp.float32),    # hoi scores
        jax.ShapeDtypeStruct((R, NC), jnp.float32),    # obj scores
        jax.ShapeDtypeStruct((1, R), jnp.int32),       # obj labels, lane-dense
    ]
    out_specs = [
        pl.BlockSpec((tr, NH), lambda t: (t, 0)),
        pl.BlockSpec((tr, NC), lambda t: (t, 0)),
        pl.BlockSpec((1, tr), lambda t: (0, t)),
    ]

    if with_boxes:
        img_h = target_sizes[:, 0].astype(jnp.float32)
        img_w = target_sizes[:, 1].astype(jnp.float32)
        scale8 = jnp.stack([img_w, img_h] * 4, axis=-1)               # (B, 8)
        slab = jnp.concatenate(
            [pred_sub_boxes.astype(jnp.float32),
             pred_obj_boxes.astype(jnp.float32),
             jnp.broadcast_to(scale8[:, None, :], (B, Q, 8))],
            axis=-1).reshape(R, 16).T                                 # (16, R)
        inputs.append(slab)
        in_specs.append(pl.BlockSpec((16, tr), lambda t: (0, t)))
        out_shape.append(jax.ShapeDtypeStruct((8, R), jnp.float32))   # xyxy boxes
        out_specs.append(pl.BlockSpec((8, tr), lambda t: (0, t)))

    outs = pl.pallas_call(
        partial(_postprocess_kernel, with_boxes),
        out_shape=tuple(out_shape),
        grid_spec=pltpu.PrefetchScalarGridSpec(
            num_scalar_prefetch=0,
            grid=(grid,),
            in_specs=in_specs,
            out_specs=out_specs),
        compiler_params=pltpu.CompilerParams(
            dimension_semantics=("parallel",),     # row tiles -> both v7x TCs
            vmem_limit_bytes=32 * 1024 * 1024),
    )(*inputs)

    hoi_scores = outs[0].reshape(B, Q, NH)
    obj_scores = outs[1].reshape(B, Q, NC)
    obj_labels = outs[2].reshape(B, Q)
    if with_boxes:
        # (8, R) slab -> (B, 2Q, 4): first Q rows = sub boxes, next Q = obj boxes
        box = outs[3]
        boxes_all = jnp.concatenate(
            [box[:4].reshape(4, B, Q), box[4:].reshape(4, B, Q)],
            axis=2).transpose(1, 2, 0)
    else:
        boxes_all = None
    return hoi_scores, obj_scores, obj_labels, boxes_all


class PostProcessHOITriplet:
    """JAX / Pallas port of models_hoiclip.hoiclip.PostProcessHOITriplet."""

    def __init__(self, subject_category_id=0):
        self.subject_category_id = subject_category_id

    def __call__(self, outputs, target_sizes, pseudo_labels=False):
        out_hoi_logits = outputs['pred_hoi_logits']
        out_obj_logits = outputs['pred_obj_logits']
        out_sub_boxes = outputs['pred_sub_boxes']
        out_obj_boxes = outputs['pred_obj_boxes']
        clip_visual = outputs['clip_visual']
        clip_logits = outputs['clip_logits']

        assert out_hoi_logits.shape[0] == target_sizes.shape[0]
        assert target_sizes.shape[1] == 2

        hoi_scores, obj_scores, obj_labels, boxes_scaled = postprocess_core(
            out_hoi_logits, out_obj_logits, out_sub_boxes, out_obj_boxes,
            target_sizes, with_boxes=not pseudo_labels)

        B, Q = obj_labels.shape
        if pseudo_labels:
            boxes_all = jnp.concatenate([out_sub_boxes, out_obj_boxes], axis=1)
        else:
            boxes_all = boxes_scaled

        subj_labels = jnp.full((B, Q), self.subject_category_id,
                               obj_labels.dtype)
        labels_all = jnp.concatenate([subj_labels, obj_labels], axis=1)  # (B, 2Q)
        ids = jnp.arange(2 * Q)
        sub_ids = ids[:Q]
        obj_ids = ids[Q:]

        # TODO(synk): torch's .to('cpu') per-tensor host transfer and int64
        # label dtype are left to the caller (labels returned as device int32).
        results = []
        for index in range(B):
            results.append({
                'labels': labels_all[index],
                'boxes': boxes_all[index],
                'hoi_scores': hoi_scores[index],
                'obj_scores': obj_scores[index],
                'clip_visual': clip_visual[index],
                'sub_ids': sub_ids,
                'obj_ids': obj_ids,
                'clip_logits': clip_logits[index],
            })
        return results


def _make_inputs(key, B, Q, NH, NC, logits_dtype):
    k1, k2, k3, k4, k5, k6 = jax.random.split(key, 6)
    outputs = {
        'pred_hoi_logits': jax.random.normal(k1, (B, Q, NH),
                                             jnp.float32).astype(logits_dtype),
        'pred_obj_logits': jax.random.normal(k2, (B, Q, NC),
                                             jnp.float32).astype(logits_dtype),
        'pred_sub_boxes': jax.random.uniform(k3, (B, Q, 4), jnp.float32,
                                             0.1, 0.9),
        'pred_obj_boxes': jax.random.uniform(k4, (B, Q, 4), jnp.float32,
                                             0.1, 0.9),
        'clip_visual': jax.random.normal(k5, (B, 32), jnp.float32),
        'clip_logits': jax.random.normal(k6, (B, NH), jnp.float32),
    }
    target_sizes = (jnp.stack(
        [jnp.arange(B, dtype=jnp.float32) * 32.0 + 480.0,
         jnp.arange(B, dtype=jnp.float32) * 64.0 + 640.0], axis=1))
    return outputs, target_sizes


def _check_case(outputs, target_sizes, results, subject_cat):
    hoi_l = outputs['pred_hoi_logits'].astype(jnp.float32)
    obj_l = outputs['pred_obj_logits'].astype(jnp.float32)
    hoi_ref = jax.nn.sigmoid(hoi_l)
    obj_ref = jax.nn.sigmoid(obj_l)
    lbl_ref = jnp.argmax(jax.nn.softmax(obj_l, -1)[..., :-1], axis=-1)

    def cxcywh_to_xyxy(b):
        return jnp.concatenate(
            [b[..., 0:1] - 0.5 * b[..., 2:3], b[..., 1:2] - 0.5 * b[..., 3:4],
             b[..., 0:1] + 0.5 * b[..., 2:3], b[..., 1:2] + 0.5 * b[..., 3:4]],
            axis=-1)

    scale = jnp.stack([target_sizes[:, 1], target_sizes[:, 0],
                       target_sizes[:, 1], target_sizes[:, 0]],
                      axis=1).astype(jnp.float32)[:, None, :]
    sub_ref = cxcywh_to_xyxy(outputs['pred_sub_boxes']) * scale
    obj_ref_b = cxcywh_to_xyxy(outputs['pred_obj_boxes']) * scale

    B, Q = lbl_ref.shape
    for b in range(B):
        r = results[b]
        assert np.allclose(np.asarray(r['hoi_scores']),
                           np.asarray(hoi_ref[b]), atol=1e-5)
        assert np.allclose(np.asarray(r['obj_scores']),
                           np.asarray(obj_ref[b]), atol=1e-5)
        assert np.array_equal(np.asarray(r['labels'][:Q]),
                              np.full(Q, subject_cat, np.int32))
        assert np.array_equal(np.asarray(r['labels'][Q:]),
                              np.asarray(lbl_ref[b]))
        assert np.allclose(np.asarray(r['boxes'][:Q]),
                           np.asarray(sub_ref[b]), atol=1e-3)
        assert np.allclose(np.asarray(r['boxes'][Q:]),
                           np.asarray(obj_ref_b[b]), atol=1e-3)


if __name__ == "__main__":
    post = PostProcessHOITriplet(subject_category_id=0)
    key = jax.random.PRNGKey(0)
    k_a, k_b = jax.random.split(key)

    # Case 1: small shapes, f32 logits, single exact block path.
    outputs1, ts1 = _make_inputs(k_a, B=2, Q=8, NH=32, NC=16,
                                 logits_dtype=jnp.float32)
    res1 = post(outputs1, ts1, pseudo_labels=False)
    for r in res1:
        for v in r.values():
            jax.block_until_ready(v)
    _check_case(outputs1, ts1, res1, subject_cat=0)

    # Case 2: larger shapes, bf16 logits on the wire, multi-tile grid (2 steps).
    outputs2, ts2 = _make_inputs(k_b, B=4, Q=128, NH=40, NC=17,
                                 logits_dtype=jnp.bfloat16)
    res2 = post(outputs2, ts2, pseudo_labels=False)
    for r in res2:
        for v in r.values():
            jax.block_until_ready(v)
    _check_case(outputs2, ts2, res2, subject_cat=0)

    # Case 3: pseudo_labels=True path (box-free kernel variant, raw boxes out).
    res3 = post(outputs1, ts1, pseudo_labels=True)
    for r in res3:
        for v in r.values():
            jax.block_until_ready(v)
    Q1 = outputs1['pred_sub_boxes'].shape[1]
    assert np.allclose(np.asarray(res3[0]['boxes'][:Q1]),
                       np.asarray(outputs1['pred_sub_boxes'][0]), atol=1e-6)
    assert np.allclose(np.asarray(res3[0]['boxes'][Q1:]),
                       np.asarray(outputs1['pred_obj_boxes'][0]), atol=1e-6)
    assert np.array_equal(np.asarray(res3[1]['labels']),
                          np.asarray(res1[1]['labels']))

    print("KERNEL_OK")
</pallas_src>

<mosaic_0001>
module attributes {stable_mosaic.version = 11 : i64} {
  func.func @_postprocess_kernel(%arg0: i32, %arg1: memref<16x32xf32, #tpu.memory_space<vmem>>, %arg2: memref<16x16xf32, #tpu.memory_space<vmem>>, %arg3: memref<16x16xf32, #tpu.memory_space<vmem>>, %arg4: memref<16x32xf32, #tpu.memory_space<vmem>>, %arg5: memref<16x16xf32, #tpu.memory_space<vmem>>, %arg6: memref<1x16xi32, #tpu.memory_space<vmem>>, %arg7: memref<8x16xf32, #tpu.memory_space<vmem>>) attributes {dimension_semantics = [#tpu.dimension_semantics<parallel>], iteration_bounds = array<i64: 1>, scalar_prefetch = 0 : i64, scratch_operands = 0 : i64, tpu.core_type = #tpu.core_type<tc>, window_params = [{transform_indices = @transform_0, window_bounds = array<i64: 16, 32>}, {transform_indices = @transform_1, window_bounds = array<i64: 16, 16>}, {transform_indices = @transform_2, window_bounds = array<i64: 16, 16>}, {transform_indices = @transform_3, window_bounds = array<i64: 16, 32>}, {transform_indices = @transform_4, window_bounds = array<i64: 16, 16>}, {transform_indices = @transform_5, window_bounds = array<i64: 1, 16>}, {transform_indices = @transform_6, window_bounds = array<i64: 8, 16>}]} {
    %c0 = arith.constant 0 : index
    %c0_0 = arith.constant 0 : index
    %0 = vector.load %arg1[%c0, %c0_0] : memref<16x32xf32, #tpu.memory_space<vmem>>, vector<16x32xf32>
    %1 = arith.negf %0 : vector<16x32xf32>
    %2 = math.exp %1 : vector<16x32xf32>
    %cst = arith.constant 1.000000e+00 : f32
    %3 = vector.broadcast %cst : f32 to vector<16x32xf32>
    %4 = arith.addf %3, %2 : vector<16x32xf32>
    %5 = arith.divf %3, %4 : vector<16x32xf32>
    %c0_1 = arith.constant 0 : index
    %c0_2 = arith.constant 0 : index
    %6 = vector.load %arg4[%c0_1, %c0_2] : memref<16x32xf32, #tpu.memory_space<vmem>>, vector<16x32xf32>
    tpu.vector_store %arg4[%c0_1, %c0_2], %5 {strides = array<i32>} : memref<16x32xf32, #tpu.memory_space<vmem>>, vector<16x32xf32>,
    %c0_3 = arith.constant 0 : index
    %c0_4 = arith.constant 0 : index
    %7 = vector.load %arg2[%c0_3, %c0_4] : memref<16x16xf32, #tpu.memory_space<vmem>>, vector<16x16xf32>
    %8 = arith.negf %7 : vector<16x16xf32>
    %9 = math.exp %8 : vector<16x16xf32>
    %cst_5 = arith.constant 1.000000e+00 : f32
    %10 = vector.broadcast %cst_5 : f32 to vector<16x16xf32>
    %11 = arith.addf %10, %9 : vector<16x16xf32>
    %12 = arith.divf %10, %11 : vector<16x16xf32>
    %c0_6 = arith.constant 0 : index
    %c0_7 = arith.constant 0 : index
    %13 = vector.load %arg5[%c0_6, %c0_7] : memref<16x16xf32, #tpu.memory_space<vmem>>, vector<16x16xf32>
    tpu.vector_store %arg5[%c0_6, %c0_7], %12 {strides = array<i32>} : memref<16x16xf32, #tpu.memory_space<vmem>>, vector<16x16xf32>,
    %14 = tpu.iota {dimensions = array<i32: 1>} : vector<16x16xi32>
    %c15_i32 = arith.constant 15 : i32
    %15 = vector.broadcast %c15_i32 : i32 to vector<16x16xi32>
    %16 = arith.cmpi slt, %14, %15 : vector<16x16xi32>
    %cst_8 = arith.constant 0xFF800000 : f32
    %17 = vector.broadcast %cst_8 : f32 to vector<16x16xf32>
    %18 = arith.select %16, %7, %17 : vector<16x16xi1>, vector<16x16xf32>
    %cst_9 = arith.constant dense<0xFF800000> : vector<16xf32>
    %19 = vector.multi_reduction <maximumf>, %18, %cst_9 [1] : vector<16x16xf32> to vector<16xf32>
    %20 = vector.shape_cast %19 : vector<16xf32> to vector<16x1xf32>
    %21 = vector.broadcast %20 : vector<16x1xf32> to vector<16x16xf32>
    %22 = arith.cmpf oeq, %18, %21 : vector<16x16xf32>
    %23 = arith.andi %22, %16 : vector<16x16xi1>
    %c15_i32_10 = arith.constant 15 : i32
    %24 = vector.broadcast %c15_i32_10 : i32 to vector<16x16xi32>
    %25 = arith.select %23, %14, %24 : vector<16x16xi1>, vector<16x16xi32>
    %cst_11 = arith.constant dense<2147483647> : vector<16xi32>
    %26 = vector.multi_reduction <minsi>, %25, %cst_11 [1] : vector<16x16xi32> to vector<16xi32>
    %27 = vector.shape_cast %26 : vector<16xi32> to vector<16x1xi32>
    %28 = arith.sitofp %27 : vector<16x1xi32> to vector<16x1xf32>
    %29 = tpu.iota {dimensions = array<i32: 0>} : vector<16x16xi32>
    %30 = tpu.iota {dimensions = array<i32: 1>} : vector<16x16xi32>
    %31 = arith.cmpi eq, %29, %30 : vector<16x16xi32>
    %cst_12 = arith.constant 0.000000e+00 : f32
    %32 = vector.shape_cast %28 : vector<16x1xf32> to vector<16x1xf32>
    %33 = vector.broadcast %32 : vector<16x1xf32> to vector<16x16xf32>
    %34 = vector.broadcast %cst_12 : f32 to vector<16x16xf32>
    %35 = arith.select %31, %33, %34 : vector<16x16xi1>, vector<16x16xf32>
    %cst_13 = arith.constant dense<0.000000e+00> : vector<16xf32>
    %36 = vector.multi_reduction <add>, %35, %cst_13 [0] : vector<16x16xf32> to vector<16xf32>
    %37 = vector.shape_cast %36 : vector<16xf32> to vector<1x16xf32>
    %38 = arith.fptosi %37 : vector<1x16xf32> to vector<1x16xi32>
    %c0_14 = arith.constant 0 : index
    %c0_15 = arith.constant 0 : index
    %39 = vector.load %arg6[%c0_14, %c0_15] : memref<1x16xi32, #tpu.memory_space<vmem>>, vector<1x16xi32>
    tpu.vector_store %arg6[%c0_14, %c0_15], %38 {strides = array<i32>} : memref<1x16xi32, #tpu.memory_space<vmem>>, vector<1x16xi32>,
    %c8 = arith.constant 8 : index
    %c0_16 = arith.constant 0 : index
    %40 = vector.load %arg3[%c8, %c0_16] : memref<16x16xf32, #tpu.memory_space<vmem>>, vector<2x16xf32>
    %c0_17 = arith.constant 0 : index
    %c0_18 = arith.constant 0 : index
    %41 = vector.load %arg3[%c0_17, %c0_18] : memref<16x16xf32, #tpu.memory_space<vmem>>, vector<2x16xf32>
    %c2 = arith.constant 2 : index
    %c0_19 = arith.constant 0 : index
    %42 = vector.load %arg3[%c2, %c0_19] : memref<16x16xf32, #tpu.memory_space<vmem>>, vector<2x16xf32>
    %cst_20 = arith.constant 5.000000e-01 : f32
    %43 = vector.broadcast %cst_20 : f32 to vector<2x16xf32>
    %44 = arith.mulf %43, %42 : vector<2x16xf32>
    %45 = arith.subf %41, %44 : vector<2x16xf32>
    %46 = arith.mulf %45, %40 : vector<2x16xf32>
    %c0_21 = arith.constant 0 : index
    %c0_22 = arith.constant 0 : index
    %47 = vector.load %arg7[%c0_21, %c0_22] : memref<8x16xf32, #tpu.memory_space<vmem>>, vector<2x16xf32>
    tpu.vector_store %arg7[%c0_21, %c0_22], %46 {strides = array<i32>} : memref<8x16xf32, #tpu.memory_space<vmem>>, vector<2x16xf32>,
    %48 = arith.addf %41, %44 : vector<2x16xf32>
    %49 = arith.mulf %48, %40 : vector<2x16xf32>
    %c2_23 = arith.constant 2 : index
    %c0_24 = arith.constant 0 : index
    %50 = vector.load %arg7[%c2_23, %c0_24] : memref<8x16xf32, #tpu.memory_space<vmem>>, vector<2x16xf32>
    tpu.vector_store %arg7[%c2_23, %c0_24], %49 {strides = array<i32>} : memref<8x16xf32, #tpu.memory_space<vmem>>, vector<2x16xf32>,
    %c4 = arith.constant 4 : index
    %c0_25 = arith.constant 0 : index
    %51 = vector.load %arg3[%c4, %c0_25] : memref<16x16xf32, #tpu.memory_space<vmem>>, vector<2x16xf32>
    %c6 = arith.constant 6 : index
    %c0_26 = arith.constant 0 : index
    %52 = vector.load %arg3[%c6, %c0_26] : memref<16x16xf32, #tpu.memory_space<vmem>>, vector<2x16xf32>
    %cst_27 = arith.constant 5.000000e-01 : f32
    %53 = vector.broadcast %cst_27 : f32 to vector<2x16xf32>
    %54 = arith.mulf %53, %52 : vector<2x16xf32>
    %55 = arith.subf %51, %54 : vector<2x16xf32>
    %56 = arith.mulf %55, %40 : vector<2x16xf32>
    %c4_28 = arith.constant 4 : index
    %c0_29 = arith.constant 0 : index
    %57 = vector.load %arg7[%c4_28, %c0_29] : memref<8x16xf32, #tpu.memory_space<vmem>>, vector<2x16xf32>
    tpu.vector_store %arg7[%c4_28, %c0_29], %56 {strides = array<i32>} : memref<8x16xf32, #tpu.memory_space<vmem>>, vector<2x16xf32>,
    %58 = arith.addf %51, %54 : vector<2x16xf32>
    %59 = arith.mulf %58, %40 : vector<2x16xf32>
    %c6_30 = arith.constant 6 : index
    %c0_31 = arith.constant 0 : index
    %60 = vector.load %arg7[%c6_30, %c0_31] : memref<8x16xf32, #tpu.memory_space<vmem>>, vector<2x16xf32>
    tpu.vector_store %arg7[%c6_30, %c0_31], %59 {strides = array<i32>} : memref<8x16xf32, #tpu.memory_space<vmem>>, vector<2x16xf32>,
    return
  }
  func.func @transform_0(%arg0: i32) -> (i32, i32) {
    %c0_i32 = arith.constant 0 : i32
    %c0_i32_0 = arith.constant 0 : i32
    return %arg0, %c0_i32 : i32, i32
  }
  func.func @transform_1(%arg0: i32) -> (i32, i32) {
    %c0_i32 = arith.constant 0 : i32
    %c0_i32_0 = arith.constant 0 : i32
    return %arg0, %c0_i32 : i32, i32
  }
  func.func @transform_2(%arg0: i32) -> (i32, i32) {
    %c0_i32 = arith.constant 0 : i32
    %c0_i32_0 = arith.constant 0 : i32
    return %c0_i32, %arg0 : i32, i32
  }
  func.func @transform_3(%arg0: i32) -> (i32, i32) {
    %c0_i32 = arith.constant 0 : i32
    %c0_i32_0 = arith.constant 0 : i32
    return %arg0, %c0_i32 : i32, i32
  }
  func.func @transform_4(%arg0: i32) -> (i32, i32) {
    %c0_i32 = arith.constant 0 : i32
    %c0_i32_0 = arith.constant 0 : i32
    return %arg0, %c0_i32 : i32, i32
  }
  func.func @transform_5(%arg0: i32) -> (i32, i32) {
    %c0_i32 = arith.constant 0 : i32
    %c0_i32_0 = arith.constant 0 : i32
    return %c0_i32, %arg0 : i32, i32
  }
  func.func @transform_6(%arg0: i32) -> (i32, i32) {
    %c0_i32 = arith.constant 0 : i32
    %c0_i32_0 = arith.constant 0 : i32
    return %c0_i32, %arg0 : i32, i32
  }
}

</mosaic_0001>

<bundles_post_ra>
// kernel: postprocess_core.1
= control target key start
LH: loop header
LB: loop body
LE: loop exit
PB: predicated region body
PF: predicated region fallthrough
CT: control target
= control target key end

     0   :  { %12 = vsyncpa [#allocation3], 0  ;;  %v54_v1 = vlaneseq  ;;  %s401_s0 = inlined_call_operand.vmem [shape: f32[16,32], index: 0, kind: input, shape index: {}]   ;;  %s402_s1 = inlined_call_operand.vmem [shape: f32[16,16], index: 1, kind: input, shape index: {}]   ;;  %s403_s2 = inlined_call_operand.vmem [shape: f32[16,16], index: 2, kind: input, shape index: {}]   ;;  %s404_s3 = inlined_call_operand.hbm [shape: f32[16,32], index: 3, kind: output, shape index: {0}]   ;;  %s405_s4 = inlined_call_operand.hbm [shape: f32[16,16], index: 4, kind: output, shape index: {1}]   ;;  %s406_s5 = inlined_call_operand.vmem [shape: s32[1,16], index: 5, kind: output, shape index: {2}]   ;;  %s407_s6 = inlined_call_operand.vmem [shape: f32[8,16], index: 6, kind: output, shape index: {3}]  }
   0x1   :  { %v37_v0 = vld [vmem:[%s402_s1] sm:$0xff]  ;;  %v38_v2 = vld [vmem:[%s402_s1 + $0x8] sm:$0xff] }
   0x2   :  { %13 = vsyncpa [#allocation5], 0  ;;  %v184_v3 = vmul.f32 -1.442695, %v37_v0  ;;  %v185_v4 = vmul.f32 -1.442695, %v38_v2 }
   0x3   :  { %v302_v5 = vand.u32 127, %v54_v1  ;;  %vm51_vm0 = vcmask 130048   ;;  %v20_v34 = vld [vmem:[%s401_s0] sm:$0xff]  ;;  %v21_v35 = vld [vmem:[%s401_s0 + $0x8] sm:$0xff]  ;;  %vm34_vm8 = vcmask 261120   ;;  %s256_s13 = smov [#allocation2]  }
   0x4   :  { %192 = vpow2.f32 %v184_v3  ;;  %v182_v36 = vmul.f32 -1.442695, %v20_v34  ;;  %v183_v37 = vmul.f32 -1.442695, %v21_v35  ;;  %v124_v42 = vld [vmem:[%s403_s2 + $0x2] sm:$0x3] }
   0x5   :  { %vm56_vm1 = vcmp.lt.s32.totalorder %v302_v5, 15  ;;  %194 = vpow2.f32 %v185_v4  ;;  %v134_v43 = vld [vmem:[%s403_s2 + $0x6] sm:$0x3]  ;;  %v125_v44 = vmul.f32 0.5, %v124_v42  ;;  %v123_v46 = vld [vmem:[%s403_s2] sm:$0x3] }
   0x6   :  { %v57_v6 = vsel %vm56_vm1, %v37_v0, -inf  ;;  %v58_v7 = vsel %vm56_vm1, %v38_v2, -inf  ;;  %v135_v45 = vmul.f32 0.5, %v134_v43  ;;  %v133_v47 = vld [vmem:[%s403_s2 + $0x4] sm:$0x3]  ;;  %s147_s14 = sshll.u32 %s256_s13, 4  ;;  %s148_s14 = int_to_ptr.vmem [resolvable:$true] %s147_s14 }
   0x7   :  { %v59_v8 = vsel %vm51_vm0, %v57_v6, -inf  ;;  %v62_v9 = vsel %vm51_vm0, %v58_v7, -inf  ;;  %v126_v48 = vsub.f32 %v123_v46, %v125_v44  ;;  %v130_v49 = vadd.f32 %v125_v44, %v123_v46  ;;  %v122_v52 = vld [vmem:[%s403_s2 + $0x8] sm:$0x3]  ;;  %s257_s15 = smov [#allocation4]   ;;  %s208_s24 = scalar_lea.vmem %s148_s14, 256 }
   0x8   :  { %60 = vmax.xlane.f32.xlu0 %v59_v8  ;;  %v136_v50 = vsub.f32 %v133_v47, %v135_v45  ;;  %v139_v51 = vadd.f32 %v135_v45, %v133_v47  ;;  %s159_s16 = sshll.u32 %s257_s15, 4  ;;  %vm128_vm9 = vcmask 123904   ;;  %p209_p0 = scmp.ne.s32.totalorder %s148_s14, %s208_s24  ;;  %s357_s16 = int_to_ptr.vmem [resolvable:$true] %s159_s16 }
   0x9   :  { %v127_v54 = vmul.f32 %v126_v48, %v122_v52  ;;  %v131_v55 = vmul.f32 %v130_v49, %v122_v52  ;;  %p213_p1 = scmp.lt.s32.totalorder %s148_s14, %s148_s14  ;;  %p214_p2 = scmp.lt.s32.totalorder %s208_s24, %s208_s24 }
   0xa   :  { %v137_v56 = vmul.f32 %v136_v50, %v122_v52  ;;  %v140_v58 = vmul.f32 %v139_v51, %v122_v52 }
   0xb   :  { %129 = vst.msk [vmem:[%s407_s6] sm:$0x3] %vm128_vm9, %v127_v54  ;;  %132 = vst.msk [vmem:[%s407_s6 + $0x2] sm:$0x3] %vm128_vm9, %v131_v55  ;;  %p215_p3 = por %p214_p2, %p213_p1 }
   0xc   :  { %63 = vmax.xlane.f32.xlu0 %v62_v9  ;;  %138 = vst.msk [vmem:[%s407_s6 + $0x4] sm:$0x3] %vm128_vm9, %v137_v56  ;;  %141 = vst.msk [vmem:[%s407_s6 + $0x6] sm:$0x3] %vm128_vm9, %v140_v58 }
   0xd   :  { %p216_p4 = pnand %p215_p3, %p209_p0 }
   0xe   :  { %v193_v10 = vpop.eup %192 }
   0xf   :  { %v195_v11 = vpop.eup %194  ;;  %v45_v12 = vadd.f32 1.0, %v193_v10 }
  0x10   :  { %v46_v13 = vadd.f32 1.0, %v195_v11 }
  0x11   :  { %196 = vrcp.f32 %v45_v12 }
  0x12   :  { %198 = vrcp.f32 %v46_v13 }
  0x13   :  { %200 = vpow2.f32 %v182_v36 }
  0x14   :  { %202 = vpow2.f32 %v183_v37 }
  0x1b   :  { %v197_v14 = vpop.eup %196 }
  0x1c   :  { %v199_v15 = vpop.eup %198  ;;  %52 = vst.msk [vmem:[#allocation4] sm:$0xff] %vm51_vm0, %v197_v14 }
  0x1d   :  { %53 = vst.msk [vmem:[#allocation4 + $0x8] sm:$0xff] %vm51_vm0, %v199_v15  ;;  %v201_v38 = vpop.eup %200 }
  0x1e   :  { %v203_v39 = vpop.eup %202  ;;  %v28_v40 = vadd.f32 1.0, %v201_v38 }
  0x1f   :  { %v29_v41 = vadd.f32 1.0, %v203_v39 }
  0x20   :  { %204 = vrcp.f32 %v28_v40 }
  0x21   :  { %206 = vrcp.f32 %v29_v41 }
  0x2a   :  { %v205_v53 = vpop.eup %204 }
  0x2b   :  { %v207_v57 = vpop.eup %206  ;;  %35 = vst.msk [vmem:[#allocation2] sm:$0xff] %vm34_vm8, %v205_v53 }
  0x2c   :  { %36 = vst.msk [vmem:[#allocation2 + $0x8] sm:$0xff] %vm34_vm8, %v207_v57 }
  0x95   :  { %v61_v16 = vpop.xlane.xlu0 %60 }
  0x96   :  { %vm65_vm2 = vcmp.eq.f32.partialorder %v57_v6, %v61_v16 }
  0x97   :  { %vm67_vm3 = vmand %vm65_vm2, %vm56_vm1 }
  0x98   :  { %v69_v17 = vsel %vm67_vm3, %v302_v5, 15 }
  0x99   :  { %v64_v18 = vpop.xlane.xlu0 %63  ;;  %v71_v19 = vsel %vm51_vm0, %v69_v17, 2147483647 }
  0x9a   :  { %vm66_vm4 = vcmp.eq.f32.partialorder %v58_v7, %v64_v18  ;;  %v73_v20 = vshra.s32 %v71_v19, 16  ;;  %v72_v26 = vand.u32 65535, %v71_v19 }
  0x9b   :  { %vm68_vm5 = vmand %vm66_vm4, %vm56_vm1 }
  0x9c   :  { %v70_v21 = vsel %vm68_vm5, %v302_v5, 15  ;;  %v75_v22 = vcvt.s32.f32 %v73_v20  ;;  %v74_v28 = vcvt.s32.f32 %v72_v26 }
  0x9d   :  { %v86_v23 = vsel %vm51_vm0, %v70_v21, 2147483647 }
  0x9e   :  { %76 = vmin.xlane.f32.xlu1 %v75_v22  ;;  %v88_v24 = vshra.s32 %v86_v23, 16  ;;  %v87_v29 = vand.u32 65535, %v86_v23 }
  0xa0   :  { %v90_v25 = vcvt.s32.f32 %v88_v24  ;;  %v89_v32 = vcvt.s32.f32 %v87_v29 }
  0xa2   :  { %91 = vmin.xlane.f32.xlu1 %v90_v25 }
 0x12b   :  { %v321_v27 = vpop.xlane.xlu1 %76 }
 0x12c   :  { %vm78_vm6 = vcmp.eq.f32.partialorder %v75_v22, %v321_v27 }
 0x12d   :  { %v79_v30 = vsel %vm78_vm6, %v74_v28, inf }
 0x12e   :  { %80 = vmin.xlane.f32.xlu0 %v79_v30 }
 0x12f   :  { %v324_v31 = vpop.xlane.xlu1 %91 }
 0x130   :  { %vm93_vm7 = vcmp.eq.f32.partialorder %v90_v25, %v324_v31 }
 0x131   :  { %v94_v33 = vsel %vm93_vm7, %v89_v32, inf }
 0x132   :  { %95 = vmin.xlane.f32.xlu1 %v94_v33 }
 0x133   :  { %219 = shalt.err (!%p216_p4)
}
 0x134   :  { %s220_s26 = scalar_lea.hbm %s404_s3, 256 }
 0x135   :  { %p221_p5 = scmp.ne.s32.totalorder %s404_s3, %s220_s26  ;;  %p224_p6 = scmp.lt.u32.totalorder %s220_s26, %s404_s3 }
 0x137   :  { %p226_p7 = pnand %p224_p6, %p221_p5 }
 0x139   :  { %229 = shalt.err (!%p226_p7)
}
 0x13a   :  { %s258_s6 = smov 128   ;;  %s259_s7 = smov 8  }
 0x13b   :  { %153 = dma.vmem_to_hbm [thread:$0]  %s148_s14, 256, %s404_s3, [#allocation3], %s258_s6, %s258_s6, %s259_s7  }
 0x13c   :  { %s230_s9 = scalar_lea.vmem %s357_s16, 256  ;;  %p235_p9 = scmp.lt.s32.totalorder %s357_s16, %s357_s16 }
 0x13d   :  { %p231_p8 = scmp.ne.s32.totalorder %s357_s16, %s230_s9  ;;  %p236_p10 = scmp.lt.s32.totalorder %s230_s9, %s230_s9 }
 0x13f   :  { %p237_p11 = por %p236_p10, %p235_p9 }
 0x141   :  { %p238_p12 = pnand %p237_p11, %p231_p8 }
 0x143   :  { %241 = shalt.err (!%p238_p12)
}
 0x144   :  { %s242_s12 = scalar_lea.hbm %s405_s4, 256 }
 0x145   :  { %p243_p13 = scmp.ne.s32.totalorder %s405_s4, %s242_s12  ;;  %p246_p0 = scmp.lt.u32.totalorder %s242_s12, %s405_s4 }
 0x147   :  { %p248_p1 = pnand %p246_p0, %p243_p13 }
 0x149   :  { %251 = shalt.err (!%p248_p1)
}
 0x14a   :  { %165 = dma.vmem_to_hbm [thread:$0]  %s357_s16, 256, %s405_s4, [#allocation5], %s258_s6, %s258_s6, %s259_s7   ;;  %v83_v59 = vcvt.f32.s32 %v321_v27  ;;  %v98_v62 = vcvt.f32.s32 %v324_v31  ;;  %v104_v0 = vshrl.u32 %v54_v1, 7  ;;  %vm120_vm12 = vcmask 122880  }
 0x14c   :  { %v84_v61 = vshll.u32 %v83_v59, 16  ;;  %v105_v3 = vadd.s32 8, %v104_v0  ;;  %v99_v6 = vshll.u32 %v98_v62, 16  ;;  %vm106_vm10 = vcmp.eq.s32.totalorder %v104_v0, %v302_v5 }
 0x14e   :  { %vm107_vm11 = vcmp.eq.s32.totalorder %v105_v3, %v302_v5 }
 0x1bb   :  { %v81_v60 = vpop.xlane.xlu0 %80 }
 0x1bc   :  { %v82_v63 = vcvt.f32.s32 %v81_v60 }
 0x1be   :  { %v85_v2 = vadd.s32 %v84_v61, %v82_v63 }
 0x1bf   :  { %v96_v4 = vpop.xlane.xlu1 %95 }
 0x1c0   :  { %v101_v7 = vcvt.s32.f32 %v85_v2  ;;  %v97_v8 = vcvt.f32.s32 %v96_v4 }
 0x1c2   :  { %v100_v9 = vadd.s32 %v99_v6, %v97_v8  ;;  %v108_v10 = vsel %vm106_vm10, %v101_v7, 0.0 }
 0x1c3   :  { %v110_v13 = vsel %vm51_vm0, %v108_v10, 0.0 }
 0x1c4   :  { %v102_v11 = vcvt.s32.f32 %v100_v9 }
 0x1c6   :  { %v109_v12 = vsel %vm107_vm11, %v102_v11, 0.0 }
 0x1c7   :  { %v111_v14 = vsel %vm51_vm0, %v109_v12, 0.0 }
 0x1c8   :  { %v112_v15 = vadd.f32 %v111_v14, %v110_v13 }
 0x1ca   :  { %v113_v1 = vrot.slane %v112_v15, 4 }
 0x1cc   :  { %v114_v16 = vadd.f32 %v113_v1, %v112_v15 }
 0x1ce   :  { %v115_v17 = vrot.slane %v114_v16, 2 }
 0x1d0   :  { %v116_v18 = vadd.f32 %v115_v17, %v114_v16 }
 0x1d2   :  { %v117_v19 = vrot.slane %v116_v18, 1 }
 0x1d4   :  { %v118_v20 = vadd.f32 %v117_v19, %v116_v18 }
 0x1d6   :  { %v186_v21 = vtrunc.f32 %v118_v20 }
 0x1d8   :  { %v187_v22 = vcvt.f32.s32 %v186_v21 }
 0x1da   :  { %121 = vst.msk [vmem:[%s406_s5] sm:$0x1] %vm120_vm12, %v187_v22 }
 0x1db   :  { %252 = dma.done.wait [#allocation3], 256  }
 0x1dc   :  { %253 = vsyncadd [#allocation3], 4294967040 }
 0x1dd   :  { %254 = dma.done.wait [#allocation5], 256  }
 0x1de   :  { %255 = vsyncadd [#allocation5], 4294967040 }
 0x1df   :  { %180 = vsyncpa [#allocation3], 1 }
 0x1e0   :  { %181 = vsyncpa [#allocation5], 1 }

</bundles_post_ra>
